<compile_context>
chip_gen: v7x
topology: tpu7x:2x2x1
jax: 0.10.0
libtpu: 0.0.40
codegen_flags: <defaults>
</compile_context>

<pallas_src>
import jax
import jax.numpy as jnp
from jax.experimental import pallas as pl
from jax.experimental.pallas import tpu as pltpu


def _round_up(x, m):
    return (x + m - 1) // m * m


def _pick_tile(n, cap, mult):
    """Tile size + padded extent such that tile | padded and TPU layout rules
    hold (tile is a multiple of `mult`, or equals the full padded dim)."""
    if n >= cap:
        return cap, _round_up(n, cap)
    t = _round_up(n, mult)
    return t, t


# ---------------- fused conv matmul (tap accumulation + epilogue) -----------

_KERNEL_CACHE = {}


def _make_matmul_kernel(has_res, relu):
    key = (has_res, relu)
    if key in _KERNEL_CACHE:
        return _KERNEL_CACHE[key]

    def _body(a_ref, b_ref, s_ref, c_ref, r_ref, o_ref, acc_ref):
        t = pl.program_id(2)
        k = pl.program_id(3)

        @pl.when(jnp.logical_and(t == 0, k == 0))
        def _():
            acc_ref[...] = jnp.zeros_like(acc_ref)

        acc_ref[...] += jnp.dot(a_ref[...], b_ref[...],
                                preferred_element_type=jnp.float32)

        @pl.when(jnp.logical_and(t == pl.num_programs(2) - 1,
                                 k == pl.num_programs(3) - 1))
        def _():
            y = acc_ref[...] * s_ref[...] + c_ref[...]
            if r_ref is not None:
                y = y + r_ref[...].astype(jnp.float32)
            if relu:
                y = jnp.maximum(y, 0.0)
            o_ref[...] = y.astype(o_ref.dtype)

    if has_res:
        def kernel(a_ref, b_ref, s_ref, c_ref, r_ref, o_ref, acc_ref):
            _body(a_ref, b_ref, s_ref, c_ref, r_ref, o_ref, acc_ref)
    else:
        def kernel(a_ref, b_ref, s_ref, c_ref, o_ref, acc_ref):
            _body(a_ref, b_ref, s_ref, c_ref, None, o_ref, acc_ref)

    _KERNEL_CACHE[key] = kernel
    return kernel


def fused_matmul(a_taps, w_taps, scale, bias, residual=None, relu=False,
                 out_dtype=jnp.bfloat16, tm_cap=256, tn_cap=256, tk_cap=512):
    """y = act( (sum_t a_taps[t] @ w_taps[t]) * scale + bias (+ residual) ).

    a_taps: [T, M, K]  w_taps: [T, K, N]  scale/bias: [N]  residual: [M, N].
    bf16 MXU operands, f32 VMEM accumulator; per-channel epilogue is applied
    in the last accumulation step (output tile stays resident across t, k).
    """
    T, M, K = a_taps.shape
    T2, K2, N = w_taps.shape
    assert T == T2 and K == K2
    tm, Mp = _pick_tile(M, tm_cap, 16)
    tn, Np = _pick_tile(N, tn_cap, 128)
    tk, Kp = _pick_tile(K, tk_cap, 16)

    a_p = a_taps.astype(jnp.bfloat16)
    if (Mp, Kp) != (M, K):
        a_p = jnp.pad(a_p, ((0, 0), (0, Mp - M), (0, Kp - K)))
    w_p = w_taps.astype(jnp.bfloat16)
    if (Kp, Np) != (K, N):
        w_p = jnp.pad(w_p, ((0, 0), (0, Kp - K), (0, Np - N)))
    s_p = jnp.pad(scale.reshape(1, -1).astype(jnp.float32),
                  ((0, 0), (0, Np - N)))
    c_p = jnp.pad(bias.reshape(1, -1).astype(jnp.float32),
                  ((0, 0), (0, Np - N)))

    in_specs = [
        pl.BlockSpec((None, tm, tk), lambda i, j, t, k: (t, i, k)),
        pl.BlockSpec((None, tk, tn), lambda i, j, t, k: (t, k, j)),
        pl.BlockSpec((1, tn), lambda i, j, t, k: (0, j)),
        pl.BlockSpec((1, tn), lambda i, j, t, k: (0, j)),
    ]
    args = [a_p, w_p, s_p, c_p]
    if residual is not None:
        r_p = residual.astype(jnp.bfloat16)
        if (Mp, Np) != residual.shape:
            r_p = jnp.pad(r_p, ((0, Mp - M), (0, Np - N)))
        in_specs.append(pl.BlockSpec((tm, tn), lambda i, j, t, k: (i, j)))
        args.append(r_p)

    out = pl.pallas_call(
        _make_matmul_kernel(residual is not None, relu),
        out_shape=jax.ShapeDtypeStruct((Mp, Np), out_dtype),
        grid_spec=pltpu.PrefetchScalarGridSpec(
            num_scalar_prefetch=0,
            grid=(Mp // tm, Np // tn, T, Kp // tk),
            in_specs=in_specs,
            out_specs=pl.BlockSpec((tm, tn), lambda i, j, t, k: (i, j)),
            scratch_shapes=[pltpu.VMEM((tm, tn), jnp.float32)]),
        compiler_params=pltpu.CompilerParams(
            dimension_semantics=("parallel", "parallel",
                                 "arbitrary", "arbitrary")),
    )(*args)
    return out[:M, :N]


# ------------------------------ conv wrapper --------------------------------

def conv2d_fused(x, w_hwio, stride=1, padding=0, scale=None, bias=None,
                 residual=None, relu=False, out_dtype=jnp.bfloat16):
    """NHWC conv + fused BN/bias/ReLU/residual.  Each filter tap is fed as an
    accumulation grid axis (no im2col matrix in HBM)."""
    B, H, W, C = x.shape
    kh, kw, cin, cout = w_hwio.shape
    assert cin == C
    if scale is None:
        scale = jnp.ones((cout,), jnp.float32)
    if bias is None:
        bias = jnp.zeros((cout,), jnp.float32)

    if kh == 1 and kw == 1 and padding == 0:
        xs = x if stride == 1 else x[:, ::stride, ::stride, :]
        _, Ho, Wo, _ = xs.shape
        a_taps = xs.reshape(1, B * Ho * Wo, cin)
        w_taps = w_hwio.reshape(1, cin, cout)
    else:
        xp = jnp.pad(x, ((0, 0), (padding, padding), (padding, padding),
                         (0, 0)))
        Hp, Wp = H + 2 * padding, W + 2 * padding
        Ho = (Hp - kh) // stride + 1
        Wo = (Wp - kw) // stride + 1
        taps = []
        for i in range(kh):
            for j in range(kw):
                taps.append(xp[:, i:i + stride * Ho:stride,
                                j:j + stride * Wo:stride, :]
                            .reshape(B * Ho * Wo, cin))
        a_taps = jnp.stack(taps, axis=0)          # [kh*kw, M, cin]
        w_taps = w_hwio.reshape(kh * kw, cin, cout)

    res2d = None
    if residual is not None:
        res2d = residual.reshape(B * Ho * Wo, cout)

    out = fused_matmul(a_taps, w_taps, scale, bias, residual=res2d,
                       relu=relu, out_dtype=out_dtype)
    return out.reshape(B, Ho, Wo, cout)


# ------------------------------ max pooling ---------------------------------

def _max_kernel(x_ref, o_ref):
    t = pl.program_id(1)

    @pl.when(t == 0)
    def _():
        o_ref[...] = x_ref[...]

    @pl.when(t > 0)
    def _():
        o_ref[...] = jnp.maximum(o_ref[...], x_ref[...])


def max_pool2d_nhwc(x, kernel, stride, padding):
    """Gridded running-max over window taps; output tile stays resident."""
    B, H, W, C = x.shape
    if padding > 0:
        xp = jnp.pad(x, ((0, 0), (padding, padding), (padding, padding),
                         (0, 0)), constant_values=-jnp.inf)
    else:
        xp = x
    Hp, Wp = H + 2 * padding, W + 2 * padding
    Ho = (Hp - kernel) // stride + 1
    Wo = (Wp - kernel) // stride + 1
    taps = []
    for i in range(kernel):
        for j in range(kernel):
            taps.append(xp[:, i:i + stride * Ho:stride,
                            j:j + stride * Wo:stride, :].reshape(B * Ho * Wo,
                                                                 C))
    a = jnp.stack(taps, axis=0)                   # [T, M, C]
    T, M, _ = a.shape
    tm, Mp = _pick_tile(M, 256, 16)
    if Mp != M:
        a = jnp.pad(a, ((0, 0), (0, Mp - M), (0, 0)))
    out = pl.pallas_call(
        _max_kernel,
        out_shape=jax.ShapeDtypeStruct((Mp, C), x.dtype),
        grid_spec=pltpu.PrefetchScalarGridSpec(
            num_scalar_prefetch=0,
            grid=(Mp // tm, T),
            in_specs=[pl.BlockSpec((None, tm, C), lambda i, t: (t, i, 0))],
            out_specs=pl.BlockSpec((tm, C), lambda i, t: (i, 0))),
        compiler_params=pltpu.CompilerParams(
            dimension_semantics=("parallel", "arbitrary")),
    )(a)
    return out[:M].reshape(B, Ho, Wo, C)


# ------------------------- input normalization ------------------------------

def _affine_kernel(x_ref, s_ref, b_ref, o_ref):
    o_ref[...] = (x_ref[...] * s_ref[...] + b_ref[...]).astype(o_ref.dtype)


def normalize_input(x_nhwc3, mean, std):
    """ImageNet per-channel normalize; emits bf16 activations."""
    B, H, W, C = x_nhwc3.shape
    M = B * H * W
    x2 = x_nhwc3.reshape(M, C).astype(jnp.float32)
    tm, Mp = _pick_tile(M, 1024, 16)
    if Mp != M:
        x2 = jnp.pad(x2, ((0, Mp - M), (0, 0)))
    s = (1.0 / std).reshape(1, C).astype(jnp.float32)
    b = (-mean / std).reshape(1, C).astype(jnp.float32)
    out = pl.pallas_call(
        _affine_kernel,
        out_shape=jax.ShapeDtypeStruct((Mp, C), jnp.bfloat16),
        grid_spec=pltpu.PrefetchScalarGridSpec(
            num_scalar_prefetch=0,
            grid=(Mp // tm,),
            in_specs=[pl.BlockSpec((tm, C), lambda i: (i, 0)),
                      pl.BlockSpec((1, C), lambda i: (0, 0)),
                      pl.BlockSpec((1, C), lambda i: (0, 0))],
            out_specs=pl.BlockSpec((tm, C), lambda i: (i, 0))),
        compiler_params=pltpu.CompilerParams(
            dimension_semantics=("parallel",)),
    )(x2, s, b)
    return out[:M].reshape(B, H, W, C)


# ------------------------- bilinear upsample (tiny) --------------------------

def _interp_matrix(n_in, n_out):
    """align_corners=True 1-D linear interpolation matrix [n_out, n_in]."""
    if n_in == 1:
        return jnp.ones((n_out, 1), jnp.float32)
    pos = jnp.arange(n_out, dtype=jnp.float32) * (n_in - 1) / (n_out - 1)
    lo = jnp.clip(jnp.floor(pos).astype(jnp.int32), 0, n_in - 2)
    frac = pos - lo.astype(jnp.float32)
    m = jnp.zeros((n_out, n_in), jnp.float32)
    idx = jnp.arange(n_out)
    m = m.at[idx, lo].add(1.0 - frac)
    m = m.at[idx, lo + 1].add(frac)
    return m


def bilinear_resize_nhwc(x, out_h, out_w):
    # Tiny op (K = H*W, a few hundred KFLOPs) -> plain XLA per perf review;
    # a Pallas launch + tk padding would be pure overhead here.
    B, H, W, C = x.shape
    ah = _interp_matrix(H, out_h)
    aw = _interp_matrix(W, out_w)
    w2 = jnp.einsum('oi,pj->opij', ah, aw).reshape(out_h * out_w, H * W)
    xf = jnp.transpose(x, (1, 2, 0, 3)).reshape(H * W, B * C).astype(
        jnp.float32)
    yf = w2 @ xf
    return jnp.transpose(yf.reshape(out_h, out_w, B, C),
                         (2, 0, 1, 3)).astype(x.dtype)


# ------------------------- deterministic parameters -------------------------

def make_params(seed=0):
    key = jax.random.PRNGKey(seed)
    kit = iter(jax.random.split(key, 1024))

    def nk():
        return next(kit)

    def conv_w(kh, kw, cin, cout):
        std = (2.0 / (kh * kw * cin)) ** 0.5
        return std * jax.random.normal(nk(), (kh, kw, cin, cout), jnp.float32)

    def bn(c):  # eval-mode BatchNorm folded to per-channel (scale, bias)
        gamma = 1.0 + 0.1 * jax.random.normal(nk(), (c,), jnp.float32)
        beta = 0.1 * jax.random.normal(nk(), (c,), jnp.float32)
        rmean = 0.1 * jax.random.normal(nk(), (c,), jnp.float32)
        rvar = 1.0 + 0.1 * jax.random.uniform(nk(), (c,), jnp.float32)
        scale = gamma / jnp.sqrt(rvar + 1e-5)
        bias = beta - rmean * scale
        return scale, bias

    p = {'conv1': conv_w(7, 7, 3, 64), 'bn1': bn(64)}
    inplanes = 64
    layers = []
    for planes, nblocks, stride in [(64, 3, 1), (128, 4, 2),
                                    (256, 6, 2), (512, 3, 2)]:
        blocks = []
        for bi in range(nblocks):
            s = stride if bi == 0 else 1
            blk = {'stride': s,
                   'w1': conv_w(1, 1, inplanes, planes), 'bn1': bn(planes),
                   'w2': conv_w(3, 3, planes, planes), 'bn2': bn(planes),
                   'w3': conv_w(1, 1, planes, planes * 4),
                   'bn3': bn(planes * 4)}
            if s != 1 or inplanes != planes * 4:
                blk['wd'] = conv_w(1, 1, inplanes, planes * 4)
                blk['bnd'] = bn(planes * 4)
            blocks.append(blk)
            inplanes = planes * 4
        layers.append(blocks)
    p['layers'] = layers
    # RecognitionNetwork(last_layer_index=[4]): 2048 -> 512 -> 10
    p['rec_w1'] = conv_w(3, 3, 2048, 512)
    p['rec_bn'] = bn(512)
    p['rec_w2'] = conv_w(1, 1, 512, 10)
    p['rec_b2'] = 0.01 * jax.random.normal(nk(), (10,), jnp.float32)
    return p


# -------------------------------- forward -----------------------------------

def bottleneck(x, blk):
    s1, b1 = blk['bn1']
    s2, b2 = blk['bn2']
    s3, b3 = blk['bn3']
    out = conv2d_fused(x, blk['w1'], scale=s1, bias=b1, relu=True)
    out = conv2d_fused(out, blk['w2'], stride=blk['stride'], padding=1,
                       scale=s2, bias=b2, relu=True)
    if 'wd' in blk:
        sd, bd = blk['bnd']
        identity = conv2d_fused(x, blk['wd'], stride=blk['stride'],
                                scale=sd, bias=bd, relu=False)
    else:
        identity = x
    # conv3 + BN + residual add + ReLU fused in one kernel epilogue
    return conv2d_fused(out, blk['w3'], scale=s3, bias=b3,
                        residual=identity, relu=True)


def thoracic_forward(params, x_nchw, grid_size=8):
    B, cin, H, W = x_nchw.shape
    assert cin in (1, 3)
    x = jnp.transpose(x_nchw, (0, 2, 3, 1)).astype(jnp.float32)  # NHWC
    # ClassifierInputs: expand([-1,3,-1,-1]) + ImageNet per-channel normalize
    if cin == 1:
        x = jnp.broadcast_to(x, (B, H, W, 3))
    mean = jnp.array([0.485, 0.456, 0.406], jnp.float32)
    std = jnp.array([0.229, 0.224, 0.225], jnp.float32)
    x = normalize_input(x, mean, std)                            # bf16 NHWC

    # ResNet-50 stem (conv + BN + ReLU fused)
    x = conv2d_fused(x, params['conv1'], stride=2, padding=3,
                     scale=params['bn1'][0], bias=params['bn1'][1], relu=True)
    x = max_pool2d_nhwc(x, 3, 2, 1)

    # layer1..layer4 (last_layer_index=[4] -> only layer4 output is returned,
    # and interpolate(x, x.size(2)) is an identity)
    for blocks in params['layers']:
        for blk in blocks:
            x = bottleneck(x, blk)

    # PatchSlicing(grid_size)
    hc = x.shape[1]
    if hc > grid_size:
        x = max_pool2d_nhwc(x, hc - grid_size + 1, 1, 0)
    elif hc < grid_size:
        x = bilinear_resize_nhwc(x, grid_size, grid_size)

    # RecognitionNetwork, return_activations=False, do_avg_pool=False
    x = conv2d_fused(x, params['rec_w1'], stride=1, padding=1,
                     scale=params['rec_bn'][0], bias=params['rec_bn'][1],
                     relu=True)
    x = conv2d_fused(x, params['rec_w2'], bias=params['rec_b2'],
                     relu=False, out_dtype=jnp.float32)
    return jnp.transpose(x, (0, 3, 1, 2))        # NCHW: [B, 10, grid, grid]


if __name__ == "__main__":
    params = make_params(0)
    x = jax.random.normal(jax.random.PRNGKey(0), (2, 1, 64, 64), jnp.float32)
    out = thoracic_forward(params, x, grid_size=8)
    out = jax.block_until_ready(out)
    assert out.shape == (2, 10, 8, 8), out.shape
    assert bool(jnp.all(jnp.isfinite(out)))
    print("KERNEL_OK")
</pallas_src>

<mosaic_0001>
module attributes {stable_mosaic.version = 11 : i64} {
  func.func @_affine_kernel(%arg0: i32, %arg1: memref<1024x3xf32, #tpu.memory_space<vmem>>, %arg2: memref<1x3xf32, #tpu.memory_space<vmem>>, %arg3: memref<1x3xf32, #tpu.memory_space<vmem>>, %arg4: memref<1024x3xbf16, #tpu.memory_space<vmem>>) attributes {dimension_semantics = [#tpu.dimension_semantics<parallel>], iteration_bounds = array<i64: 8>, scalar_prefetch = 0 : i64, scratch_operands = 0 : i64, tpu.core_type = #tpu.core_type<tc>, window_params = [{transform_indices = @transform_0, window_bounds = array<i64: 1024, 3>}, {pipeline_mode = #tpu.pipeline_mode<synchronous>, transform_indices = @transform_1, window_bounds = array<i64: 1, 3>}, {pipeline_mode = #tpu.pipeline_mode<synchronous>, transform_indices = @transform_2, window_bounds = array<i64: 1, 3>}, {transform_indices = @transform_3, window_bounds = array<i64: 1024, 3>}]} {
    %c0 = arith.constant 0 : index
    %c0_0 = arith.constant 0 : index
    %0 = vector.load %arg1[%c0, %c0_0] : memref<1024x3xf32, #tpu.memory_space<vmem>>, vector<1024x3xf32>
    %c0_1 = arith.constant 0 : index
    %c0_2 = arith.constant 0 : index
    %1 = vector.load %arg2[%c0_1, %c0_2] : memref<1x3xf32, #tpu.memory_space<vmem>>, vector<1x3xf32>
    %2 = vector.broadcast %1 : vector<1x3xf32> to vector<1024x3xf32>
    %3 = arith.mulf %0, %2 : vector<1024x3xf32>
    %c0_3 = arith.constant 0 : index
    %c0_4 = arith.constant 0 : index
    %4 = vector.load %arg3[%c0_3, %c0_4] : memref<1x3xf32, #tpu.memory_space<vmem>>, vector<1x3xf32>
    %5 = vector.broadcast %4 : vector<1x3xf32> to vector<1024x3xf32>
    %6 = arith.addf %3, %5 : vector<1024x3xf32>
    %7 = arith.truncf %6 : vector<1024x3xf32> to vector<1024x3xbf16>
    %c0_5 = arith.constant 0 : index
    %c0_6 = arith.constant 0 : index
    %8 = vector.load %arg4[%c0_5, %c0_6] : memref<1024x3xbf16, #tpu.memory_space<vmem>>, vector<1024x3xbf16>
    tpu.vector_store %arg4[%c0_5, %c0_6], %7 {strides = array<i32>} : memref<1024x3xbf16, #tpu.memory_space<vmem>>, vector<1024x3xbf16>,
    return
  }
  func.func @transform_0(%arg0: i32) -> (i32, i32) {
    %c0_i32 = arith.constant 0 : i32
    %c0_i32_0 = arith.constant 0 : i32
    return %arg0, %c0_i32 : i32, i32
  }
  func.func @transform_1(%arg0: i32) -> (i32, i32) {
    %c0_i32 = arith.constant 0 : i32
    %c0_i32_0 = arith.constant 0 : i32
    %c0_i32_1 = arith.constant 0 : i32
    return %c0_i32, %c0_i32_0 : i32, i32
  }
  func.func @transform_2(%arg0: i32) -> (i32, i32) {
    %c0_i32 = arith.constant 0 : i32
    %c0_i32_0 = arith.constant 0 : i32
    %c0_i32_1 = arith.constant 0 : i32
    return %c0_i32, %c0_i32_0 : i32, i32
  }
  func.func @transform_3(%arg0: i32) -> (i32, i32) {
    %c0_i32 = arith.constant 0 : i32
    %c0_i32_0 = arith.constant 0 : i32
    return %arg0, %c0_i32 : i32, i32
  }
}

</mosaic_0001>

<bundles_post_ra>
// kernel: tpu_custom_call.1
= control target key start
LH: loop header
LB: loop body
LE: loop exit
PB: predicated region body
PF: predicated region fallthrough
CT: control target
= control target key end

     0   :  { %s1576_s12 = smov 0   ;;  %s2257_s0 = inlined_call_operand.vmem [shape: f32[8192,3], index: 0, kind: input, shape index: {}]   ;;  %s2258_s1 = inlined_call_operand.vmem [shape: f32[1,3], index: 1, kind: input, shape index: {}]   ;;  %s2259_s2 = inlined_call_operand.vmem [shape: f32[1,3], index: 2, kind: input, shape index: {}]   ;;  %s2260_s3 = inlined_call_operand.vmem [shape: bf16[8192,3], index: 3, kind: output, shape index: {}]  }
   0x1 LB: > { %s1269_s13 = sadd.s32 4294967295, %s1554_s12   ;;  %p1273_p0 = scmp.ge.s32.totalorder %s1554_s12, 1  ;;  %s1554_s12 = sphi %s1576_s12, %s13_s12  }
   0x2   : > { %p138_p1 = scmp.lt.s32.totalorder %s1554_s12, 9 }
   0x4   : > { %p139_p2 = pnand %p1273_p0, %p138_p1 }
   0x5   : > { %s1274_s14 = sshll.u32 (!%p139_p2), %s1269_s13, 7  ;;  %v1587_v0 = vld [vmem:[%s2258_s1] ss:$0 sm:$0xff] (!%p139_p2)  ;;  %vm1084_vm0 = vcmask (!%p139_p2), 19456  }
   0x6   : > { %142 = sbr.rel (%p139_p2) target bundleno = 132 (0x84), region = 32  ;;  %p163_p3 = scmp.lt.s32.totalorder (!%p139_p2), %s1274_s14, 1023  ;;  %v1597_v1 = vld [vmem:[%s2259_s2] ss:$0 sm:$0xff] (!%p139_p2) }
   0xd   : > { %s2262_s14 = smov (!%p163_p3, %s1274_s14), 1023 }
   0xe   : > { %s1275_s15 = sshll.u32 %s2262_s14, 3  ;;  %s1277_s23 = sshll.u32 %s2262_s14, 2 }
   0xf   : > { %s1592_s20 = scalar_lea.vmem %s2257_s0, %s1275_s15  ;;  %s1620_s26 = scalar_lea.vmem %s2260_s3, %s1277_s23 }
  0x10   : > { %v174_v2 = vld [vmem:[%s1592_s20] sm:$0xff]  ;;  %v175_v3 = vld [vmem:[%s1592_s20 + $0x8] sm:$0xff]  ;;  %v176_v4 = vld [vmem:[%s1592_s20 + $0x10] sm:$0xff] }
  0x11   : > { %v309_v5 = vmul.f32 %v1587_v0, %v174_v2  ;;  %v310_v6 = vmul.f32 %v1587_v0, %v175_v3  ;;  %v311_v7 = vmul.f32 %v1587_v0, %v176_v4  ;;  %v177_v8 = vld [vmem:[%s1592_s20 + $0x18] sm:$0xff]  ;;  %v178_v9 = vld [vmem:[%s1592_s20 + $0x20] sm:$0xff]  ;;  %v179_v10 = vld [vmem:[%s1592_s20 + $0x28] sm:$0xff] }
  0x12   : > { %v312_v11 = vmul.f32 %v1587_v0, %v177_v8  ;;  %v313_v12 = vmul.f32 %v1587_v0, %v178_v9  ;;  %v314_v13 = vmul.f32 %v1587_v0, %v179_v10  ;;  %v180_v14 = vld [vmem:[%s1592_s20 + $0x30] sm:$0xff]  ;;  %v181_v15 = vld [vmem:[%s1592_s20 + $0x38] sm:$0xff]  ;;  %v182_v24 = vld [vmem:[%s1592_s20 + $0x40] sm:$0xff] }
  0x13   : > { %v444_v16 = vadd.f32 %v1597_v1, %v309_v5  ;;  %v445_v17 = vadd.f32 %v1597_v1, %v310_v6  ;;  %v446_v18 = vadd.f32 %v1597_v1, %v311_v7  ;;  %v315_v19 = vmul.f32 %v1587_v0, %v180_v14  ;;  %v183_v25 = vld [vmem:[%s1592_s20 + $0x48] sm:$0xff]  ;;  %v184_v26 = vld [vmem:[%s1592_s20 + $0x50] sm:$0xff]  ;;  %v185_v31 = vld [vmem:[%s1592_s20 + $0x58] sm:$0xff] }
  0x14   : > { %v447_v20 = vadd.f32 %v1597_v1, %v312_v11  ;;  %v448_v21 = vadd.f32 %v1597_v1, %v313_v12  ;;  %v449_v22 = vadd.f32 %v1597_v1, %v314_v13  ;;  %v316_v23 = vmul.f32 %v1587_v0, %v181_v15  ;;  %v186_v32 = vld [vmem:[%s1592_s20 + $0x60] sm:$0xff]  ;;  %v187_v33 = vld [vmem:[%s1592_s20 + $0x68] sm:$0xff]  ;;  %v188_v38 = vld [vmem:[%s1592_s20 + $0x70] sm:$0xff] }
  0x15   : > { %v1410_v27 = vpack.c.bf16 %v444_v16, %v444_v16  ;;  %v1411_v28 = vpack.c.bf16 %v445_v17, %v445_v17  ;;  %v1412_v29 = vpack.c.bf16 %v446_v18, %v446_v18  ;;  %v450_v30 = vadd.f32 %v1597_v1, %v315_v19  ;;  %v189_v43 = vld [vmem:[%s1592_s20 + $0x78] sm:$0xff]  ;;  %v190_v56 = vld [vmem:[%s1592_s20 + $0x80] sm:$0xff]  ;;  %v191_v57 = vld [vmem:[%s1592_s20 + $0x88] sm:$0xff] }
  0x16   : > { %v1413_v34 = vpack.c.bf16 %v447_v20, %v447_v20  ;;  %v1414_v35 = vpack.c.bf16 %v448_v21, %v448_v21  ;;  %v1415_v36 = vpack.c.bf16 %v449_v22, %v449_v22  ;;  %v451_v37 = vadd.f32 %v1597_v1, %v316_v23  ;;  %v192_v58 = vld [vmem:[%s1592_s20 + $0x90] sm:$0xff]  ;;  %v193_v63 = vld [vmem:[%s1592_s20 + $0x98] sm:$0xff]  ;;  %v194_v2 = vld [vmem:[%s1592_s20 + $0xa0] sm:$0xff] }
  0x17   : > { %1085 = vst.msk [vmem:[%s1620_s26] sm:$0xf] %vm1084_vm0, %v1410_v27  ;;  %1086 = vst.msk [vmem:[%s1620_s26 + $0x4] sm:$0xf] %vm1084_vm0, %v1411_v28  ;;  %v1416_v39 = vpack.c.bf16 %v450_v30, %v450_v30  ;;  %v317_v40 = vmul.f32 %v1587_v0, %v182_v24  ;;  %v318_v41 = vmul.f32 %v1587_v0, %v183_v25  ;;  %v195_v3 = vld [vmem:[%s1592_s20 + $0xa8] sm:$0xff]  ;;  %v196_v8 = vld [vmem:[%s1592_s20 + $0xb0] sm:$0xff] }
  0x18   : > { %1087 = vst.msk [vmem:[%s1620_s26 + $0x8] sm:$0xf] %vm1084_vm0, %v1412_v29  ;;  %v319_v42 = vmul.f32 %v1587_v0, %v184_v26  ;;  %1088 = vst.msk [vmem:[%s1620_s26 + $0xc] sm:$0xf] %vm1084_vm0, %v1413_v34  ;;  %v1417_v44 = vpack.c.bf16 %v451_v37, %v451_v37  ;;  %v320_v45 = vmul.f32 %v1587_v0, %v185_v31  ;;  %v197_v13 = vld [vmem:[%s1592_s20 + $0xb8] sm:$0xff]  ;;  %v198_v26 = vld [vmem:[%s1592_s20 + $0xc0] sm:$0xff] }
  0x19   : > { %1089 = vst.msk [vmem:[%s1620_s26 + $0x10] sm:$0xf] %vm1084_vm0, %v1414_v35  ;;  %1090 = vst.msk [vmem:[%s1620_s26 + $0x14] sm:$0xf] %vm1084_vm0, %v1415_v36  ;;  %v321_v46 = vmul.f32 %v1587_v0, %v186_v32  ;;  %v322_v47 = vmul.f32 %v1587_v0, %v187_v33  ;;  %v452_v48 = vadd.f32 %v1597_v1, %v317_v40  ;;  %v199_v27 = vld [vmem:[%s1592_s20 + $0xc8] sm:$0xff]  ;;  %v200_v28 = vld [vmem:[%s1592_s20 + $0xd0] sm:$0xff] }
  0x1a   : > { %1091 = vst.msk [vmem:[%s1620_s26 + $0x18] sm:$0xf] %vm1084_vm0, %v1416_v39  ;;  %v453_v49 = vadd.f32 %v1597_v1, %v318_v41  ;;  %v454_v50 = vadd.f32 %v1597_v1, %v319_v42  ;;  %v323_v51 = vmul.f32 %v1587_v0, %v188_v38  ;;  %1092 = vst.msk [vmem:[%s1620_s26 + $0x1c] sm:$0xf] %vm1084_vm0, %v1417_v44  ;;  %v201_v33 = vld [vmem:[%s1592_s20 + $0xd8] sm:$0xff]  ;;  %v202_v34 = vld [vmem:[%s1592_s20 + $0xe0] sm:$0xff] }
  0x1b   : > { %v455_v52 = vadd.f32 %v1597_v1, %v320_v45  ;;  %v456_v53 = vadd.f32 %v1597_v1, %v321_v46  ;;  %v457_v54 = vadd.f32 %v1597_v1, %v322_v47  ;;  %v324_v55 = vmul.f32 %v1587_v0, %v189_v43  ;;  %v203_v35 = vld [vmem:[%s1592_s20 + $0xe8] sm:$0xff]  ;;  %v204_v40 = vld [vmem:[%s1592_s20 + $0xf0] sm:$0xff]  ;;  %v205_v45 = vld [vmem:[%s1592_s20 + $0xf8] sm:$0xff] }
  0x1c   : > { %v1418_v59 = vpack.c.bf16 %v452_v48, %v452_v48  ;;  %v1419_v60 = vpack.c.bf16 %v453_v49, %v453_v49  ;;  %v1420_v61 = vpack.c.bf16 %v454_v50, %v454_v50  ;;  %v458_v62 = vadd.f32 %v1597_v1, %v323_v51 }
  0x1d   : > { %v1421_v4 = vpack.c.bf16 %v455_v52, %v455_v52  ;;  %v1422_v5 = vpack.c.bf16 %v456_v53, %v456_v53  ;;  %v1423_v6 = vpack.c.bf16 %v457_v54, %v457_v54  ;;  %v459_v7 = vadd.f32 %v1597_v1, %v324_v55 }
  0x1e   : > { %1093 = vst.msk [vmem:[%s1620_s26 + $0x20] sm:$0xf] %vm1084_vm0, %v1418_v59  ;;  %1094 = vst.msk [vmem:[%s1620_s26 + $0x24] sm:$0xf] %vm1084_vm0, %v1419_v60  ;;  %v1424_v9 = vpack.c.bf16 %v458_v62, %v458_v62  ;;  %v325_v10 = vmul.f32 %v1587_v0, %v190_v56  ;;  %v326_v11 = vmul.f32 %v1587_v0, %v191_v57  ;;  %v207_v59 = vld [vmem:[%s1592_s20 + $0x108] sm:$0xff]  ;;  %v208_v60 = vld [vmem:[%s1592_s20 + $0x110] sm:$0xff] }
  0x1f   : > { %1095 = vst.msk [vmem:[%s1620_s26 + $0x28] sm:$0xf] %vm1084_vm0, %v1420_v61  ;;  %v327_v12 = vmul.f32 %v1587_v0, %v192_v58  ;;  %1096 = vst.msk [vmem:[%s1620_s26 + $0x2c] sm:$0xf] %vm1084_vm0, %v1421_v4  ;;  %v1425_v14 = vpack.c.bf16 %v459_v7, %v459_v7  ;;  %v328_v15 = vmul.f32 %v1587_v0, %v193_v63  ;;  %v206_v58 = vld [vmem:[%s1592_s20 + $0x100] sm:$0xff] }
  0x20   : > { %1097 = vst.msk [vmem:[%s1620_s26 + $0x30] sm:$0xf] %vm1084_vm0, %v1422_v5  ;;  %1098 = vst.msk [vmem:[%s1620_s26 + $0x34] sm:$0xf] %vm1084_vm0, %v1423_v6  ;;  %v329_v16 = vmul.f32 %v1587_v0, %v194_v2  ;;  %v330_v17 = vmul.f32 %v1587_v0, %v195_v3  ;;  %v460_v18 = vadd.f32 %v1597_v1, %v325_v10  ;;  %v209_v3 = vld [vmem:[%s1592_s20 + $0x118] sm:$0xff]  ;;  %v210_v4 = vld [vmem:[%s1592_s20 + $0x120] sm:$0xff] }
  0x21   : > { %1099 = vst.msk [vmem:[%s1620_s26 + $0x38] sm:$0xf] %vm1084_vm0, %v1424_v9  ;;  %v461_v19 = vadd.f32 %v1597_v1, %v326_v11  ;;  %v462_v20 = vadd.f32 %v1597_v1, %v327_v12  ;;  %v331_v21 = vmul.f32 %v1587_v0, %v196_v8  ;;  %1100 = vst.msk [vmem:[%s1620_s26 + $0x3c] sm:$0xf] %vm1084_vm0, %v1425_v14  ;;  %v211_v5 = vld [vmem:[%s1592_s20 + $0x128] sm:$0xff]  ;;  %v212_v10 = vld [vmem:[%s1592_s20 + $0x130] sm:$0xff] }
  0x22   : > { %v463_v22 = vadd.f32 %v1597_v1, %v328_v15  ;;  %v464_v23 = vadd.f32 %v1597_v1, %v329_v16  ;;  %v465_v24 = vadd.f32 %v1597_v1, %v330_v17  ;;  %v332_v25 = vmul.f32 %v1587_v0, %v197_v13  ;;  %v213_v15 = vld [vmem:[%s1592_s20 + $0x138] sm:$0xff] }
  0x23   : > { %v1426_v29 = vpack.c.bf16 %v460_v18, %v460_v18  ;;  %v1427_v30 = vpack.c.bf16 %v461_v19, %v461_v19  ;;  %v1428_v31 = vpack.c.bf16 %v462_v20, %v462_v20  ;;  %v466_v32 = vadd.f32 %v1597_v1, %v331_v21 }
  0x24   : > { %v1429_v36 = vpack.c.bf16 %v463_v22, %v463_v22  ;;  %v1430_v37 = vpack.c.bf16 %v464_v23, %v464_v23  ;;  %v1431_v38 = vpack.c.bf16 %v465_v24, %v465_v24  ;;  %v467_v39 = vadd.f32 %v1597_v1, %v332_v25 }
  0x25   : > { %1101 = vst.msk [vmem:[%s1620_s26 + $0x40] sm:$0xf] %vm1084_vm0, %v1426_v29  ;;  %1102 = vst.msk [vmem:[%s1620_s26 + $0x44] sm:$0xf] %vm1084_vm0, %v1427_v30  ;;  %v1432_v41 = vpack.c.bf16 %v466_v32, %v466_v32  ;;  %v333_v42 = vmul.f32 %v1587_v0, %v198_v26  ;;  %v334_v43 = vmul.f32 %v1587_v0, %v199_v27  ;;  %v215_v29 = vld [vmem:[%s1592_s20 + $0x148] sm:$0xff]  ;;  %v216_v30 = vld [vmem:[%s1592_s20 + $0x150] sm:$0xff] }
  0x26   : > { %1103 = vst.msk [vmem:[%s1620_s26 + $0x48] sm:$0xf] %vm1084_vm0, %v1428_v31  ;;  %v335_v44 = vmul.f32 %v1587_v0, %v200_v28  ;;  %1104 = vst.msk [vmem:[%s1620_s26 + $0x4c] sm:$0xf] %vm1084_vm0, %v1429_v36  ;;  %v1433_v46 = vpack.c.bf16 %v467_v39, %v467_v39  ;;  %v336_v47 = vmul.f32 %v1587_v0, %v201_v33  ;;  %v214_v28 = vld [vmem:[%s1592_s20 + $0x140] sm:$0xff] }
  0x27   : > { %1105 = vst.msk [vmem:[%s1620_s26 + $0x50] sm:$0xf] %vm1084_vm0, %v1430_v37  ;;  %1106 = vst.msk [vmem:[%s1620_s26 + $0x54] sm:$0xf] %vm1084_vm0, %v1431_v38  ;;  %v337_v48 = vmul.f32 %v1587_v0, %v202_v34  ;;  %v338_v49 = vmul.f32 %v1587_v0, %v203_v35  ;;  %v468_v50 = vadd.f32 %v1597_v1, %v333_v42  ;;  %v217_v35 = vld [vmem:[%s1592_s20 + $0x158] sm:$0xff]  ;;  %v218_v36 = vld [vmem:[%s1592_s20 + $0x160] sm:$0xff] }
  0x28   : > { %1107 = vst.msk [vmem:[%s1620_s26 + $0x58] sm:$0xf] %vm1084_vm0, %v1432_v41  ;;  %v469_v51 = vadd.f32 %v1597_v1, %v334_v43  ;;  %v470_v52 = vadd.f32 %v1597_v1, %v335_v44  ;;  %v339_v53 = vmul.f32 %v1587_v0, %v204_v40  ;;  %1108 = vst.msk [vmem:[%s1620_s26 + $0x5c] sm:$0xf] %vm1084_vm0, %v1433_v46  ;;  %v219_v37 = vld [vmem:[%s1592_s20 + $0x168] sm:$0xff]  ;;  %v220_v42 = vld [vmem:[%s1592_s20 + $0x170] sm:$0xff] }
  0x29   : > { %v471_v54 = vadd.f32 %v1597_v1, %v336_v47  ;;  %v472_v55 = vadd.f32 %v1597_v1, %v337_v48  ;;  %v473_v56 = vadd.f32 %v1597_v1, %v338_v49  ;;  %v340_v57 = vmul.f32 %v1587_v0, %v205_v45  ;;  %v221_v47 = vld [vmem:[%s1592_s20 + $0x178] sm:$0xff] }
  0x2a   : > { %v1434_v61 = vpack.c.bf16 %v468_v50, %v468_v50  ;;  %v1435_v62 = vpack.c.bf16 %v469_v51, %v469_v51  ;;  %v1436_v63 = vpack.c.bf16 %v470_v52, %v470_v52  ;;  %v474_v2 = vadd.f32 %v1597_v1, %v339_v53 }
  0x2b   : > { %v1437_v6 = vpack.c.bf16 %v471_v54, %v471_v54  ;;  %v1438_v7 = vpack.c.bf16 %v472_v55, %v472_v55  ;;  %v1439_v8 = vpack.c.bf16 %v473_v56, %v473_v56  ;;  %v475_v9 = vadd.f32 %v1597_v1, %v340_v57 }
  0x2c   : > { %1109 = vst.msk [vmem:[%s1620_s26 + $0x60] sm:$0xf] %vm1084_vm0, %v1434_v61  ;;  %1110 = vst.msk [vmem:[%s1620_s26 + $0x64] sm:$0xf] %vm1084_vm0, %v1435_v62  ;;  %v1440_v11 = vpack.c.bf16 %v474_v2, %v474_v2  ;;  %v341_v12 = vmul.f32 %v1587_v0, %v206_v58  ;;  %v342_v13 = vmul.f32 %v1587_v0, %v207_v59  ;;  %v223_v61 = vld [vmem:[%s1592_s20 + $0x188] sm:$0xff]  ;;  %v224_v62 = vld [vmem:[%s1592_s20 + $0x190] sm:$0xff] }
  0x2d   : > { %1111 = vst.msk [vmem:[%s1620_s26 + $0x68] sm:$0xf] %vm1084_vm0, %v1436_v63  ;;  %v343_v14 = vmul.f32 %v1587_v0, %v208_v60  ;;  %1112 = vst.msk [vmem:[%s1620_s26 + $0x6c] sm:$0xf] %vm1084_vm0, %v1437_v6  ;;  %v1441_v16 = vpack.c.bf16 %v475_v9, %v475_v9  ;;  %v344_v17 = vmul.f32 %v1587_v0, %v209_v3  ;;  %v222_v60 = vld [vmem:[%s1592_s20 + $0x180] sm:$0xff] }
  0x2e   : > { %1113 = vst.msk [vmem:[%s1620_s26 + $0x70] sm:$0xf] %vm1084_vm0, %v1438_v7  ;;  %1114 = vst.msk [vmem:[%s1620_s26 + $0x74] sm:$0xf] %vm1084_vm0, %v1439_v8  ;;  %v345_v18 = vmul.f32 %v1587_v0, %v210_v4  ;;  %v346_v19 = vmul.f32 %v1587_v0, %v211_v5  ;;  %v476_v20 = vadd.f32 %v1597_v1, %v341_v12  ;;  %v225_v5 = vld [vmem:[%s1592_s20 + $0x198] sm:$0xff]  ;;  %v226_v6 = vld [vmem:[%s1592_s20 + $0x1a0] sm:$0xff] }
  0x2f   : > { %1115 = vst.msk [vmem:[%s1620_s26 + $0x78] sm:$0xf] %vm1084_vm0, %v1440_v11  ;;  %v477_v21 = vadd.f32 %v1597_v1, %v342_v13  ;;  %v478_v22 = vadd.f32 %v1597_v1, %v343_v14  ;;  %v347_v23 = vmul.f32 %v1587_v0, %v212_v10  ;;  %1116 = vst.msk [vmem:[%s1620_s26 + $0x7c] sm:$0xf] %vm1084_vm0, %v1441_v16  ;;  %v227_v7 = vld [vmem:[%s1592_s20 + $0x1a8] sm:$0xff]  ;;  %v228_v12 = vld [vmem:[%s1592_s20 + $0x1b0] sm:$0xff] }
  0x30   : > { %v479_v24 = vadd.f32 %v1597_v1, %v344_v17  ;;  %v480_v25 = vadd.f32 %v1597_v1, %v345_v18  ;;  %v481_v26 = vadd.f32 %v1597_v1, %v346_v19  ;;  %v348_v27 = vmul.f32 %v1587_v0, %v213_v15  ;;  %v229_v17 = vld [vmem:[%s1592_s20 + $0x1b8] sm:$0xff] }
  0x31   : > { %v1442_v31 = vpack.c.bf16 %v476_v20, %v476_v20  ;;  %v1443_v32 = vpack.c.bf16 %v477_v21, %v477_v21  ;;  %v1444_v33 = vpack.c.bf16 %v478_v22, %v478_v22  ;;  %v482_v34 = vadd.f32 %v1597_v1, %v347_v23 }
  0x32   : > { %v1445_v38 = vpack.c.bf16 %v479_v24, %v479_v24  ;;  %v1446_v39 = vpack.c.bf16 %v480_v25, %v480_v25  ;;  %v1447_v40 = vpack.c.bf16 %v481_v26, %v481_v26  ;;  %v483_v41 = vadd.f32 %v1597_v1, %v348_v27 }
  0x33   : > { %1117 = vst.msk [vmem:[%s1620_s26 + $0x80] sm:$0xf] %vm1084_vm0, %v1442_v31  ;;  %1118 = vst.msk [vmem:[%s1620_s26 + $0x84] sm:$0xf] %vm1084_vm0, %v1443_v32  ;;  %v1448_v43 = vpack.c.bf16 %v482_v34, %v482_v34  ;;  %v349_v44 = vmul.f32 %v1587_v0, %v214_v28  ;;  %v350_v45 = vmul.f32 %v1587_v0, %v215_v29  ;;  %v231_v31 = vld [vmem:[%s1592_s20 + $0x1c8] sm:$0xff]  ;;  %v232_v32 = vld [vmem:[%s1592_s20 + $0x1d0] sm:$0xff] }
  0x34   : > { %1119 = vst.msk [vmem:[%s1620_s26 + $0x88] sm:$0xf] %vm1084_vm0, %v1444_v33  ;;  %v351_v46 = vmul.f32 %v1587_v0, %v216_v30  ;;  %1120 = vst.msk [vmem:[%s1620_s26 + $0x8c] sm:$0xf] %vm1084_vm0, %v1445_v38  ;;  %v1449_v48 = vpack.c.bf16 %v483_v41, %v483_v41  ;;  %v352_v49 = vmul.f32 %v1587_v0, %v217_v35  ;;  %v230_v30 = vld [vmem:[%s1592_s20 + $0x1c0] sm:$0xff] }
  0x35   : > { %1121 = vst.msk [vmem:[%s1620_s26 + $0x90] sm:$0xf] %vm1084_vm0, %v1446_v39  ;;  %1122 = vst.msk [vmem:[%s1620_s26 + $0x94] sm:$0xf] %vm1084_vm0, %v1447_v40  ;;  %v353_v50 = vmul.f32 %v1587_v0, %v218_v36  ;;  %v354_v51 = vmul.f32 %v1587_v0, %v219_v37  ;;  %v484_v52 = vadd.f32 %v1597_v1, %v349_v44  ;;  %v233_v37 = vld [vmem:[%s1592_s20 + $0x1d8] sm:$0xff]  ;;  %v234_v38 = vld [vmem:[%s1592_s20 + $0x1e0] sm:$0xff] }
  0x36   : > { %1123 = vst.msk [vmem:[%s1620_s26 + $0x98] sm:$0xf] %vm1084_vm0, %v1448_v43  ;;  %v485_v53 = vadd.f32 %v1597_v1, %v350_v45  ;;  %v486_v54 = vadd.f32 %v1597_v1, %v351_v46  ;;  %v355_v55 = vmul.f32 %v1587_v0, %v220_v42  ;;  %1124 = vst.msk [vmem:[%s1620_s26 + $0x9c] sm:$0xf] %vm1084_vm0, %v1449_v48  ;;  %v235_v39 = vld [vmem:[%s1592_s20 + $0x1e8] sm:$0xff]  ;;  %v236_v44 = vld [vmem:[%s1592_s20 + $0x1f0] sm:$0xff] }
  0x37   : > { %v487_v56 = vadd.f32 %v1597_v1, %v352_v49  ;;  %v488_v57 = vadd.f32 %v1597_v1, %v353_v50  ;;  %v489_v58 = vadd.f32 %v1597_v1, %v354_v51  ;;  %v356_v59 = vmul.f32 %v1587_v0, %v221_v47  ;;  %v237_v49 = vld [vmem:[%s1592_s20 + $0x1f8] sm:$0xff] }
  0x38   : > { %v1450_v63 = vpack.c.bf16 %v484_v52, %v484_v52  ;;  %v1451_v2 = vpack.c.bf16 %v485_v53, %v485_v53  ;;  %v1452_v3 = vpack.c.bf16 %v486_v54, %v486_v54  ;;  %v490_v4 = vadd.f32 %v1597_v1, %v355_v55 }
  0x39   : > { %v1453_v8 = vpack.c.bf16 %v487_v56, %v487_v56  ;;  %v1454_v9 = vpack.c.bf16 %v488_v57, %v488_v57  ;;  %v1455_v10 = vpack.c.bf16 %v489_v58, %v489_v58  ;;  %v491_v11 = vadd.f32 %v1597_v1, %v356_v59 }
  0x3a   : > { %1125 = vst.msk [vmem:[%s1620_s26 + $0xa0] sm:$0xf] %vm1084_vm0, %v1450_v63  ;;  %1126 = vst.msk [vmem:[%s1620_s26 + $0xa4] sm:$0xf] %vm1084_vm0, %v1451_v2  ;;  %v1456_v13 = vpack.c.bf16 %v490_v4, %v490_v4  ;;  %v357_v14 = vmul.f32 %v1587_v0, %v222_v60  ;;  %v358_v15 = vmul.f32 %v1587_v0, %v223_v61  ;;  %v239_v63 = vld [vmem:[%s1592_s20 + $0x208] sm:$0xff]  ;;  %v240_v2 = vld [vmem:[%s1592_s20 + $0x210] sm:$0xff] }
  0x3b   : > { %1127 = vst.msk [vmem:[%s1620_s26 + $0xa8] sm:$0xf] %vm1084_vm0, %v1452_v3  ;;  %v359_v16 = vmul.f32 %v1587_v0, %v224_v62  ;;  %1128 = vst.msk [vmem:[%s1620_s26 + $0xac] sm:$0xf] %vm1084_vm0, %v1453_v8  ;;  %v1457_v18 = vpack.c.bf16 %v491_v11, %v491_v11  ;;  %v360_v19 = vmul.f32 %v1587_v0, %v225_v5  ;;  %v238_v62 = vld [vmem:[%s1592_s20 + $0x200] sm:$0xff] }
  0x3c   : > { %1129 = vst.msk [vmem:[%s1620_s26 + $0xb0] sm:$0xf] %vm1084_vm0, %v1454_v9  ;;  %1130 = vst.msk [vmem:[%s1620_s26 + $0xb4] sm:$0xf] %vm1084_vm0, %v1455_v10  ;;  %v361_v20 = vmul.f32 %v1587_v0, %v226_v6  ;;  %v362_v21 = vmul.f32 %v1587_v0, %v227_v7  ;;  %v492_v22 = vadd.f32 %v1597_v1, %v357_v14  ;;  %v241_v7 = vld [vmem:[%s1592_s20 + $0x218] sm:$0xff]  ;;  %v242_v8 = vld [vmem:[%s1592_s20 + $0x220] sm:$0xff] }
  0x3d   : > { %1131 = vst.msk [vmem:[%s1620_s26 + $0xb8] sm:$0xf] %vm1084_vm0, %v1456_v13  ;;  %v493_v23 = vadd.f32 %v1597_v1, %v358_v15  ;;  %v494_v24 = vadd.f32 %v1597_v1, %v359_v16  ;;  %v363_v25 = vmul.f32 %v1587_v0, %v228_v12  ;;  %1132 = vst.msk [vmem:[%s1620_s26 + $0xbc] sm:$0xf] %vm1084_vm0, %v1457_v18  ;;  %v243_v9 = vld [vmem:[%s1592_s20 + $0x228] sm:$0xff]  ;;  %v244_v14 = vld [vmem:[%s1592_s20 + $0x230] sm:$0xff] }
  0x3e   : > { %v495_v26 = vadd.f32 %v1597_v1, %v360_v19  ;;  %v496_v27 = vadd.f32 %v1597_v1, %v361_v20  ;;  %v497_v28 = vadd.f32 %v1597_v1, %v362_v21  ;;  %v364_v29 = vmul.f32 %v1587_v0, %v229_v17  ;;  %v245_v19 = vld [vmem:[%s1592_s20 + $0x238] sm:$0xff] }
  0x3f   : > { %v1458_v33 = vpack.c.bf16 %v492_v22, %v492_v22  ;;  %v1459_v34 = vpack.c.bf16 %v493_v23, %v493_v23  ;;  %v1460_v35 = vpack.c.bf16 %v494_v24, %v494_v24  ;;  %v498_v36 = vadd.f32 %v1597_v1, %v363_v25 }
  0x40   : > { %v1461_v40 = vpack.c.bf16 %v495_v26, %v495_v26  ;;  %v1462_v41 = vpack.c.bf16 %v496_v27, %v496_v27  ;;  %v1463_v42 = vpack.c.bf16 %v497_v28, %v497_v28  ;;  %v499_v43 = vadd.f32 %v1597_v1, %v364_v29 }
  0x41   : > { %1133 = vst.msk [vmem:[%s1620_s26 + $0xc0] sm:$0xf] %vm1084_vm0, %v1458_v33  ;;  %1134 = vst.msk [vmem:[%s1620_s26 + $0xc4] sm:$0xf] %vm1084_vm0, %v1459_v34  ;;  %v1464_v45 = vpack.c.bf16 %v498_v36, %v498_v36  ;;  %v365_v46 = vmul.f32 %v1587_v0, %v230_v30  ;;  %v366_v47 = vmul.f32 %v1587_v0, %v231_v31  ;;  %v247_v33 = vld [vmem:[%s1592_s20 + $0x248] sm:$0xff]  ;;  %v248_v34 = vld [vmem:[%s1592_s20 + $0x250] sm:$0xff] }
  0x42   : > { %1135 = vst.msk [vmem:[%s1620_s26 + $0xc8] sm:$0xf] %vm1084_vm0, %v1460_v35  ;;  %v367_v48 = vmul.f32 %v1587_v0, %v232_v32  ;;  %1136 = vst.msk [vmem:[%s1620_s26 + $0xcc] sm:$0xf] %vm1084_vm0, %v1461_v40  ;;  %v1465_v50 = vpack.c.bf16 %v499_v43, %v499_v43  ;;  %v368_v51 = vmul.f32 %v1587_v0, %v233_v37  ;;  %v246_v32 = vld [vmem:[%s1592_s20 + $0x240] sm:$0xff] }
  0x43   : > { %1137 = vst.msk [vmem:[%s1620_s26 + $0xd0] sm:$0xf] %vm1084_vm0, %v1462_v41  ;;  %1138 = vst.msk [vmem:[%s1620_s26 + $0xd4] sm:$0xf] %vm1084_vm0, %v1463_v42  ;;  %v369_v52 = vmul.f32 %v1587_v0, %v234_v38  ;;  %v370_v53 = vmul.f32 %v1587_v0, %v235_v39  ;;  %v500_v54 = vadd.f32 %v1597_v1, %v365_v46  ;;  %v249_v39 = vld [vmem:[%s1592_s20 + $0x258] sm:$0xff]  ;;  %v250_v40 = vld [vmem:[%s1592_s20 + $0x260] sm:$0xff] }
  0x44   : > { %1139 = vst.msk [vmem:[%s1620_s26 + $0xd8] sm:$0xf] %vm1084_vm0, %v1464_v45  ;;  %v501_v55 = vadd.f32 %v1597_v1, %v366_v47  ;;  %v502_v56 = vadd.f32 %v1597_v1, %v367_v48  ;;  %v371_v57 = vmul.f32 %v1587_v0, %v236_v44  ;;  %1140 = vst.msk [vmem:[%s1620_s26 + $0xdc] sm:$0xf] %vm1084_vm0, %v1465_v50  ;;  %v251_v41 = vld [vmem:[%s1592_s20 + $0x268] sm:$0xff]  ;;  %v252_v46 = vld [vmem:[%s1592_s20 + $0x270] sm:$0xff] }
  0x45   : > { %v503_v58 = vadd.f32 %v1597_v1, %v368_v51  ;;  %v504_v59 = vadd.f32 %v1597_v1, %v369_v52  ;;  %v505_v60 = vadd.f32 %v1597_v1, %v370_v53  ;;  %v372_v61 = vmul.f32 %v1587_v0, %v237_v49  ;;  %v253_v51 = vld [vmem:[%s1592_s20 + $0x278] sm:$0xff] }
  0x46   : > { %v1466_v3 = vpack.c.bf16 %v500_v54, %v500_v54  ;;  %v1467_v4 = vpack.c.bf16 %v501_v55, %v501_v55  ;;  %v1468_v5 = vpack.c.bf16 %v502_v56, %v502_v56  ;;  %v506_v6 = vadd.f32 %v1597_v1, %v371_v57 }
  0x47   : > { %v1469_v10 = vpack.c.bf16 %v503_v58, %v503_v58  ;;  %v1470_v11 = vpack.c.bf16 %v504_v59, %v504_v59  ;;  %v1471_v12 = vpack.c.bf16 %v505_v60, %v505_v60  ;;  %v507_v13 = vadd.f32 %v1597_v1, %v372_v61 }
  0x48   : > { %1141 = vst.msk [vmem:[%s1620_s26 + $0xe0] sm:$0xf] %vm1084_vm0, %v1466_v3  ;;  %1142 = vst.msk [vmem:[%s1620_s26 + $0xe4] sm:$0xf] %vm1084_vm0, %v1467_v4  ;;  %v1472_v15 = vpack.c.bf16 %v506_v6, %v506_v6  ;;  %v373_v16 = vmul.f32 %v1587_v0, %v238_v62  ;;  %v374_v17 = vmul.f32 %v1587_v0, %v239_v63  ;;  %v255_v3 = vld [vmem:[%s1592_s20 + $0x288] sm:$0xff]  ;;  %v256_v4 = vld [vmem:[%s1592_s20 + $0x290] sm:$0xff] }
  0x49   : > { %1143 = vst.msk [vmem:[%s1620_s26 + $0xe8] sm:$0xf] %vm1084_vm0, %v1468_v5  ;;  %v375_v18 = vmul.f32 %v1587_v0, %v240_v2  ;;  %1144 = vst.msk [vmem:[%s1620_s26 + $0xec] sm:$0xf] %vm1084_vm0, %v1469_v10  ;;  %v1473_v20 = vpack.c.bf16 %v507_v13, %v507_v13  ;;  %v376_v21 = vmul.f32 %v1587_v0, %v241_v7  ;;  %v254_v2 = vld [vmem:[%s1592_s20 + $0x280] sm:$0xff] }
  0x4a   : > { %1145 = vst.msk [vmem:[%s1620_s26 + $0xf0] sm:$0xf] %vm1084_vm0, %v1470_v11  ;;  %1146 = vst.msk [vmem:[%s1620_s26 + $0xf4] sm:$0xf] %vm1084_vm0, %v1471_v12  ;;  %v377_v22 = vmul.f32 %v1587_v0, %v242_v8  ;;  %v378_v23 = vmul.f32 %v1587_v0, %v243_v9  ;;  %v508_v24 = vadd.f32 %v1597_v1, %v373_v16  ;;  %v257_v9 = vld [vmem:[%s1592_s20 + $0x298] sm:$0xff]  ;;  %v258_v10 = vld [vmem:[%s1592_s20 + $0x2a0] sm:$0xff] }
  0x4b   : > { %1147 = vst.msk [vmem:[%s1620_s26 + $0xf8] sm:$0xf] %vm1084_vm0, %v1472_v15  ;;  %v509_v25 = vadd.f32 %v1597_v1, %v374_v17  ;;  %v510_v26 = vadd.f32 %v1597_v1, %v375_v18  ;;  %v379_v27 = vmul.f32 %v1587_v0, %v244_v14  ;;  %1148 = vst.msk [vmem:[%s1620_s26 + $0xfc] sm:$0xf] %vm1084_vm0, %v1473_v20  ;;  %v259_v11 = vld [vmem:[%s1592_s20 + $0x2a8] sm:$0xff]  ;;  %v260_v16 = vld [vmem:[%s1592_s20 + $0x2b0] sm:$0xff] }
  0x4c   : > { %v511_v28 = vadd.f32 %v1597_v1, %v376_v21  ;;  %v512_v29 = vadd.f32 %v1597_v1, %v377_v22  ;;  %v513_v30 = vadd.f32 %v1597_v1, %v378_v23  ;;  %v380_v31 = vmul.f32 %v1587_v0, %v245_v19  ;;  %v261_v21 = vld [vmem:[%s1592_s20 + $0x2b8] sm:$0xff] }
  0x4d   : > { %v1474_v35 = vpack.c.bf16 %v508_v24, %v508_v24  ;;  %v1475_v36 = vpack.c.bf16 %v509_v25, %v509_v25  ;;  %v1476_v37 = vpack.c.bf16 %v510_v26, %v510_v26  ;;  %v514_v38 = vadd.f32 %v1597_v1, %v379_v27 }
  0x4e   : > { %v1477_v42 = vpack.c.bf16 %v511_v28, %v511_v28  ;;  %v1478_v43 = vpack.c.bf16 %v512_v29, %v512_v29  ;;  %v1479_v44 = vpack.c.bf16 %v513_v30, %v513_v30  ;;  %v515_v45 = vadd.f32 %v1597_v1, %v380_v31 }
  0x4f   : > { %1149 = vst.msk [vmem:[%s1620_s26 + $0x100] sm:$0xf] %vm1084_vm0, %v1474_v35  ;;  %1150 = vst.msk [vmem:[%s1620_s26 + $0x104] sm:$0xf] %vm1084_vm0, %v1475_v36  ;;  %v1480_v47 = vpack.c.bf16 %v514_v38, %v514_v38  ;;  %v381_v48 = vmul.f32 %v1587_v0, %v246_v32  ;;  %v382_v49 = vmul.f32 %v1587_v0, %v247_v33  ;;  %v263_v35 = vld [vmem:[%s1592_s20 + $0x2c8] sm:$0xff]  ;;  %v264_v36 = vld [vmem:[%s1592_s20 + $0x2d0] sm:$0xff] }
  0x50   : > { %1151 = vst.msk [vmem:[%s1620_s26 + $0x108] sm:$0xf] %vm1084_vm0, %v1476_v37  ;;  %v383_v50 = vmul.f32 %v1587_v0, %v248_v34  ;;  %1152 = vst.msk [vmem:[%s1620_s26 + $0x10c] sm:$0xf] %vm1084_vm0, %v1477_v42  ;;  %v1481_v52 = vpack.c.bf16 %v515_v45, %v515_v45  ;;  %v384_v53 = vmul.f32 %v1587_v0, %v249_v39  ;;  %v262_v34 = vld [vmem:[%s1592_s20 + $0x2c0] sm:$0xff] }
  0x51   : > { %1153 = vst.msk [vmem:[%s1620_s26 + $0x110] sm:$0xf] %vm1084_vm0, %v1478_v43  ;;  %1154 = vst.msk [vmem:[%s1620_s26 + $0x114] sm:$0xf] %vm1084_vm0, %v1479_v44  ;;  %v385_v54 = vmul.f32 %v1587_v0, %v250_v40  ;;  %v386_v55 = vmul.f32 %v1587_v0, %v251_v41  ;;  %v516_v56 = vadd.f32 %v1597_v1, %v381_v48  ;;  %v265_v41 = vld [vmem:[%s1592_s20 + $0x2d8] sm:$0xff]  ;;  %v266_v42 = vld [vmem:[%s1592_s20 + $0x2e0] sm:$0xff] }
  0x52   : > { %1155 = vst.msk [vmem:[%s1620_s26 + $0x118] sm:$0xf] %vm1084_vm0, %v1480_v47  ;;  %v517_v57 = vadd.f32 %v1597_v1, %v382_v49  ;;  %v518_v58 = vadd.f32 %v1597_v1, %v383_v50  ;;  %v387_v59 = vmul.f32 %v1587_v0, %v252_v46  ;;  %1156 = vst.msk [vmem:[%s1620_s26 + $0x11c] sm:$0xf] %vm1084_vm0, %v1481_v52  ;;  %v267_v43 = vld [vmem:[%s1592_s20 + $0x2e8] sm:$0xff]  ;;  %v268_v48 = vld [vmem:[%s1592_s20 + $0x2f0] sm:$0xff] }
  0x53   : > { %v519_v60 = vadd.f32 %v1597_v1, %v384_v53  ;;  %v520_v61 = vadd.f32 %v1597_v1, %v385_v54  ;;  %v521_v62 = vadd.f32 %v1597_v1, %v386_v55  ;;  %v388_v63 = vmul.f32 %v1587_v0, %v253_v51  ;;  %v269_v53 = vld [vmem:[%s1592_s20 + $0x2f8] sm:$0xff] }
  0x54   : > { %v1482_v5 = vpack.c.bf16 %v516_v56, %v516_v56  ;;  %v1483_v6 = vpack.c.bf16 %v517_v57, %v517_v57  ;;  %v1484_v7 = vpack.c.bf16 %v518_v58, %v518_v58  ;;  %v522_v8 = vadd.f32 %v1597_v1, %v387_v59 }
  0x55   : > { %v1485_v12 = vpack.c.bf16 %v519_v60, %v519_v60  ;;  %v1486_v13 = vpack.c.bf16 %v520_v61, %v520_v61  ;;  %v1487_v14 = vpack.c.bf16 %v521_v62, %v521_v62  ;;  %v523_v15 = vadd.f32 %v1597_v1, %v388_v63 }
  0x56   : > { %1157 = vst.msk [vmem:[%s1620_s26 + $0x120] sm:$0xf] %vm1084_vm0, %v1482_v5  ;;  %1158 = vst.msk [vmem:[%s1620_s26 + $0x124] sm:$0xf] %vm1084_vm0, %v1483_v6  ;;  %v1488_v17 = vpack.c.bf16 %v522_v8, %v522_v8  ;;  %v389_v18 = vmul.f32 %v1587_v0, %v254_v2  ;;  %v390_v19 = vmul.f32 %v1587_v0, %v255_v3  ;;  %v271_v5 = vld [vmem:[%s1592_s20 + $0x308] sm:$0xff]  ;;  %v272_v6 = vld [vmem:[%s1592_s20 + $0x310] sm:$0xff] }
  0x57   : > { %1159 = vst.msk [vmem:[%s1620_s26 + $0x128] sm:$0xf] %vm1084_vm0, %v1484_v7  ;;  %v391_v20 = vmul.f32 %v1587_v0, %v256_v4  ;;  %1160 = vst.msk [vmem:[%s1620_s26 + $0x12c] sm:$0xf] %vm1084_vm0, %v1485_v12  ;;  %v1489_v22 = vpack.c.bf16 %v523_v15, %v523_v15  ;;  %v392_v23 = vmul.f32 %v1587_v0, %v257_v9  ;;  %v270_v4 = vld [vmem:[%s1592_s20 + $0x300] sm:$0xff] }
  0x58   : > { %1161 = vst.msk [vmem:[%s1620_s26 + $0x130] sm:$0xf] %vm1084_vm0, %v1486_v13  ;;  %1162 = vst.msk [vmem:[%s1620_s26 + $0x134] sm:$0xf] %vm1084_vm0, %v1487_v14  ;;  %v393_v24 = vmul.f32 %v1587_v0, %v258_v10  ;;  %v394_v25 = vmul.f32 %v1587_v0, %v259_v11  ;;  %v524_v26 = vadd.f32 %v1597_v1, %v389_v18  ;;  %v273_v11 = vld [vmem:[%s1592_s20 + $0x318] sm:$0xff]  ;;  %v274_v12 = vld [vmem:[%s1592_s20 + $0x320] sm:$0xff] }
  0x59   : > { %1163 = vst.msk [vmem:[%s1620_s26 + $0x138] sm:$0xf] %vm1084_vm0, %v1488_v17  ;;  %v525_v27 = vadd.f32 %v1597_v1, %v390_v19  ;;  %v526_v28 = vadd.f32 %v1597_v1, %v391_v20  ;;  %v395_v29 = vmul.f32 %v1587_v0, %v260_v16  ;;  %1164 = vst.msk [vmem:[%s1620_s26 + $0x13c] sm:$0xf] %vm1084_vm0, %v1489_v22  ;;  %v275_v13 = vld [vmem:[%s1592_s20 + $0x328] sm:$0xff]  ;;  %v276_v18 = vld [vmem:[%s1592_s20 + $0x330] sm:$0xff] }
  0x5a   : > { %v527_v30 = vadd.f32 %v1597_v1, %v392_v23  ;;  %v528_v31 = vadd.f32 %v1597_v1, %v393_v24  ;;  %v529_v32 = vadd.f32 %v1597_v1, %v394_v25  ;;  %v396_v33 = vmul.f32 %v1587_v0, %v261_v21  ;;  %v277_v23 = vld [vmem:[%s1592_s20 + $0x338] sm:$0xff] }
  0x5b   : > { %v1490_v37 = vpack.c.bf16 %v524_v26, %v524_v26  ;;  %v1491_v38 = vpack.c.bf16 %v525_v27, %v525_v27  ;;  %v1492_v39 = vpack.c.bf16 %v526_v28, %v526_v28  ;;  %v530_v40 = vadd.f32 %v1597_v1, %v395_v29 }
  0x5c   : > { %v1493_v44 = vpack.c.bf16 %v527_v30, %v527_v30  ;;  %v1494_v45 = vpack.c.bf16 %v528_v31, %v528_v31  ;;  %v1495_v46 = vpack.c.bf16 %v529_v32, %v529_v32  ;;  %v531_v47 = vadd.f32 %v1597_v1, %v396_v33 }
  0x5d   : > { %1165 = vst.msk [vmem:[%s1620_s26 + $0x140] sm:$0xf] %vm1084_vm0, %v1490_v37  ;;  %1166 = vst.msk [vmem:[%s1620_s26 + $0x144] sm:$0xf] %vm1084_vm0, %v1491_v38  ;;  %v1496_v49 = vpack.c.bf16 %v530_v40, %v530_v40  ;;  %v397_v50 = vmul.f32 %v1587_v0, %v262_v34  ;;  %v398_v51 = vmul.f32 %v1587_v0, %v263_v35  ;;  %v279_v37 = vld [vmem:[%s1592_s20 + $0x348] sm:$0xff]  ;;  %v280_v38 = vld [vmem:[%s1592_s20 + $0x350] sm:$0xff] }
  0x5e   : > { %1167 = vst.msk [vmem:[%s1620_s26 + $0x148] sm:$0xf] %vm1084_vm0, %v1492_v39  ;;  %v399_v52 = vmul.f32 %v1587_v0, %v264_v36  ;;  %1168 = vst.msk [vmem:[%s1620_s26 + $0x14c] sm:$0xf] %vm1084_vm0, %v1493_v44  ;;  %v1497_v54 = vpack.c.bf16 %v531_v47, %v531_v47  ;;  %v400_v55 = vmul.f32 %v1587_v0, %v265_v41  ;;  %v278_v36 = vld [vmem:[%s1592_s20 + $0x340] sm:$0xff]  ;;  %v283_v44 = vld [vmem:[%s1592_s20 + $0x368] sm:$0xff] }
  0x5f   : > { %1169 = vst.msk [vmem:[%s1620_s26 + $0x150] sm:$0xf] %vm1084_vm0, %v1494_v45  ;;  %1170 = vst.msk [vmem:[%s1620_s26 + $0x154] sm:$0xf] %vm1084_vm0, %v1495_v46  ;;  %v401_v56 = vmul.f32 %v1587_v0, %v266_v42  ;;  %v402_v57 = vmul.f32 %v1587_v0, %v267_v43  ;;  %v532_v58 = vadd.f32 %v1597_v1, %v397_v50  ;;  %v2112_v42 = vld [vmem:[%s2259_s2] ss:$0 sm:$0xff] }
  0x60   : > { %1171 = vst.msk [vmem:[%s1620_s26 + $0x158] sm:$0xf] %vm1084_vm0, %v1496_v49  ;;  %v533_v59 = vadd.f32 %v1597_v1, %v398_v51  ;;  %v534_v60 = vadd.f32 %v1597_v1, %v399_v52  ;;  %v403_v61 = vmul.f32 %v1587_v0, %v268_v48  ;;  %1172 = vst.msk [vmem:[%s1620_s26 + $0x15c] sm:$0xf] %vm1084_vm0, %v1497_v54  ;;  %v284_v49 = vld [vmem:[%s1592_s20 + $0x370] sm:$0xff] }
  0x61   : > { %v535_v62 = vadd.f32 %v1597_v1, %v400_v55  ;;  %v536_v63 = vadd.f32 %v1597_v1, %v401_v56  ;;  %v537_v2 = vadd.f32 %v1597_v1, %v402_v57  ;;  %v404_v3 = vmul.f32 %v1587_v0, %v269_v53  ;;  %v2129_v51 = vld [vmem:[%s2258_s1] ss:$0 sm:$0xff]  ;;  %v285_v55 = vld [vmem:[%s1592_s20 + $0x378] sm:$0xff] }
  0x62   : > { %v1498_v7 = vpack.c.bf16 %v532_v58, %v532_v58  ;;  %v1499_v8 = vpack.c.bf16 %v533_v59, %v533_v59  ;;  %v1500_v9 = vpack.c.bf16 %v534_v60, %v534_v60  ;;  %v538_v10 = vadd.f32 %v1597_v1, %v403_v61 }
  0x63   : > { %v1501_v14 = vpack.c.bf16 %v535_v62, %v535_v62  ;;  %v1502_v15 = vpack.c.bf16 %v536_v63, %v536_v63  ;;  %v1503_v16 = vpack.c.bf16 %v537_v2, %v537_v2  ;;  %v539_v17 = vadd.f32 %v1597_v1, %v404_v3 }
  0x64   : > { %1173 = vst.msk [vmem:[%s1620_s26 + $0x160] sm:$0xf] %vm1084_vm0, %v1498_v7  ;;  %1174 = vst.msk [vmem:[%s1620_s26 + $0x164] sm:$0xf] %vm1084_vm0, %v1499_v8  ;;  %v1504_v19 = vpack.c.bf16 %v538_v10, %v538_v10  ;;  %v405_v20 = vmul.f32 %v1587_v0, %v270_v4  ;;  %v406_v21 = vmul.f32 %v1587_v0, %v271_v5  ;;  %v287_v7 = vld [vmem:[%s1592_s20 + $0x388] sm:$0xff]  ;;  %v288_v8 = vld [vmem:[%s1592_s20 + $0x390] sm:$0xff] }
  0x65   : > { %1175 = vst.msk [vmem:[%s1620_s26 + $0x168] sm:$0xf] %vm1084_vm0, %v1500_v9  ;;  %v407_v22 = vmul.f32 %v1587_v0, %v272_v6  ;;  %1176 = vst.msk [vmem:[%s1620_s26 + $0x16c] sm:$0xf] %vm1084_vm0, %v1501_v14  ;;  %v1505_v24 = vpack.c.bf16 %v539_v17, %v539_v17  ;;  %v408_v25 = vmul.f32 %v1587_v0, %v273_v11  ;;  %v286_v6 = vld [vmem:[%s1592_s20 + $0x380] sm:$0xff] }
  0x66   : > { %1177 = vst.msk [vmem:[%s1620_s26 + $0x170] sm:$0xf] %vm1084_vm0, %v1502_v15  ;;  %1178 = vst.msk [vmem:[%s1620_s26 + $0x174] sm:$0xf] %vm1084_vm0, %v1503_v16  ;;  %v409_v26 = vmul.f32 %v1587_v0, %v274_v12  ;;  %v410_v27 = vmul.f32 %v1587_v0, %v275_v13  ;;  %v540_v28 = vadd.f32 %v1597_v1, %v405_v20  ;;  %v289_v13 = vld [vmem:[%s1592_s20 + $0x398] sm:$0xff]  ;;  %v290_v14 = vld [vmem:[%s1592_s20 + $0x3a0] sm:$0xff] }
  0x67   : > { %1179 = vst.msk [vmem:[%s1620_s26 + $0x178] sm:$0xf] %vm1084_vm0, %v1504_v19  ;;  %v541_v29 = vadd.f32 %v1597_v1, %v406_v21  ;;  %v542_v30 = vadd.f32 %v1597_v1, %v407_v22  ;;  %v411_v31 = vmul.f32 %v1587_v0, %v276_v18  ;;  %1180 = vst.msk [vmem:[%s1620_s26 + $0x17c] sm:$0xf] %vm1084_vm0, %v1505_v24  ;;  %v291_v15 = vld [vmem:[%s1592_s20 + $0x3a8] sm:$0xff]  ;;  %v292_v20 = vld [vmem:[%s1592_s20 + $0x3b0] sm:$0xff] }
  0x68   : > { %v543_v32 = vadd.f32 %v1597_v1, %v408_v25  ;;  %v544_v33 = vadd.f32 %v1597_v1, %v409_v26  ;;  %v545_v34 = vadd.f32 %v1597_v1, %v410_v27  ;;  %v412_v35 = vmul.f32 %v1587_v0, %v277_v23  ;;  %v281_v1 = vld [vmem:[%s1592_s20 + $0x358] sm:$0xff]  ;;  %v282_v0 = vld [vmem:[%s1592_s20 + $0x360] sm:$0xff] }
  0x69   : > { %v1506_v39 = vpack.c.bf16 %v540_v28, %v540_v28  ;;  %v1507_v40 = vpack.c.bf16 %v541_v29, %v541_v29  ;;  %v1508_v41 = vpack.c.bf16 %v542_v30, %v542_v30  ;;  %v546_v43 = vadd.f32 %v2112_v42, %v411_v31  ;;  %v293_v25 = vld [vmem:[%s1592_s20 + $0x3b8] sm:$0xff] }
  0x6a   : > { %v1509_v45 = vpack.c.bf16 %v543_v32, %v543_v32  ;;  %v1510_v46 = vpack.c.bf16 %v544_v33, %v544_v33  ;;  %v1511_v47 = vpack.c.bf16 %v545_v34, %v545_v34  ;;  %v547_v48 = vadd.f32 %v2112_v42, %v412_v35 }
  0x6b   : > { %1181 = vst.msk [vmem:[%s1620_s26 + $0x180] sm:$0xf] %vm1084_vm0, %v1506_v39  ;;  %1182 = vst.msk [vmem:[%s1620_s26 + $0x184] sm:$0xf] %vm1084_vm0, %v1507_v40  ;;  %v1512_v50 = vpack.c.bf16 %v546_v43, %v546_v43  ;;  %v413_v52 = vmul.f32 %v2129_v51, %v278_v36  ;;  %v414_v53 = vmul.f32 %v2129_v51, %v279_v37  ;;  %v295_v39 = vld [vmem:[%s1592_s20 + $0x3c8] sm:$0xff]  ;;  %v296_v40 = vld [vmem:[%s1592_s20 + $0x3d0] sm:$0xff] }
  0x6c   : > { %1183 = vst.msk [vmem:[%s1620_s26 + $0x188] sm:$0xf] %vm1084_vm0, %v1508_v41  ;;  %v415_v54 = vmul.f32 %v2129_v51, %v280_v38  ;;  %1184 = vst.msk [vmem:[%s1620_s26 + $0x18c] sm:$0xf] %vm1084_vm0, %v1509_v45  ;;  %v1513_v56 = vpack.c.bf16 %v547_v48, %v547_v48  ;;  %v416_v57 = vmul.f32 %v2129_v51, %v281_v1  ;;  %v294_v38 = vld [vmem:[%s1592_s20 + $0x3c0] sm:$0xff] }
  0x6d   : > { %1185 = vst.msk [vmem:[%s1620_s26 + $0x190] sm:$0xf] %vm1084_vm0, %v1510_v46  ;;  %1186 = vst.msk [vmem:[%s1620_s26 + $0x194] sm:$0xf] %vm1084_vm0, %v1511_v47  ;;  %v417_v58 = vmul.f32 %v2129_v51, %v282_v0  ;;  %v418_v59 = vmul.f32 %v2129_v51, %v283_v44  ;;  %v548_v60 = vadd.f32 %v2112_v42, %v413_v52  ;;  %v297_v44 = vld [vmem:[%s1592_s20 + $0x3d8] sm:$0xff]  ;;  %v298_v45 = vld [vmem:[%s1592_s20 + $0x3e0] sm:$0xff] }
  0x6e   : > { %1187 = vst.msk [vmem:[%s1620_s26 + $0x198] sm:$0xf] %vm1084_vm0, %v1512_v50  ;;  %v549_v61 = vadd.f32 %v2112_v42, %v414_v53  ;;  %v550_v62 = vadd.f32 %v2112_v42, %v415_v54  ;;  %v419_v63 = vmul.f32 %v2129_v51, %v284_v49  ;;  %1188 = vst.msk [vmem:[%s1620_s26 + $0x19c] sm:$0xf] %vm1084_vm0, %v1513_v56  ;;  %v299_v46 = vld [vmem:[%s1592_s20 + $0x3e8] sm:$0xff]  ;;  %v300_v52 = vld [vmem:[%s1592_s20 + $0x3f0] sm:$0xff] }
  0x6f   : > { %v551_v2 = vadd.f32 %v2112_v42, %v416_v57  ;;  %v552_v3 = vadd.f32 %v2112_v42, %v417_v58  ;;  %v553_v4 = vadd.f32 %v2112_v42, %v418_v59  ;;  %v420_v5 = vmul.f32 %v2129_v51, %v285_v55  ;;  %v301_v57 = vld [vmem:[%s1592_s20 + $0x3f8] sm:$0xff] }
  0x70   : > { %v1514_v9 = vpack.c.bf16 %v548_v60, %v548_v60  ;;  %v1515_v10 = vpack.c.bf16 %v549_v61, %v549_v61  ;;  %v1516_v11 = vpack.c.bf16 %v550_v62, %v550_v62  ;;  %v554_v12 = vadd.f32 %v2112_v42, %v419_v63 }
  0x71   : > { %v1517_v16 = vpack.c.bf16 %v551_v2, %v551_v2  ;;  %v1518_v17 = vpack.c.bf16 %v552_v3, %v552_v3  ;;  %v1519_v18 = vpack.c.bf16 %v553_v4, %v553_v4  ;;  %v555_v19 = vadd.f32 %v2112_v42, %v420_v5 }
  0x72   : > { %1189 = vst.msk [vmem:[%s1620_s26 + $0x1a0] sm:$0xf] %vm1084_vm0, %v1514_v9  ;;  %1190 = vst.msk [vmem:[%s1620_s26 + $0x1a4] sm:$0xf] %vm1084_vm0, %v1515_v10  ;;  %v1520_v21 = vpack.c.bf16 %v554_v12, %v554_v12  ;;  %v421_v22 = vmul.f32 %v2129_v51, %v286_v6  ;;  %v422_v23 = vmul.f32 %v2129_v51, %v287_v7 }
  0x73   : > { %1191 = vst.msk [vmem:[%s1620_s26 + $0x1a8] sm:$0xf] %vm1084_vm0, %v1516_v11  ;;  %v423_v24 = vmul.f32 %v2129_v51, %v288_v8  ;;  %1192 = vst.msk [vmem:[%s1620_s26 + $0x1ac] sm:$0xf] %vm1084_vm0, %v1517_v16  ;;  %v1521_v26 = vpack.c.bf16 %v555_v19, %v555_v19  ;;  %v424_v27 = vmul.f32 %v2129_v51, %v289_v13 }
  0x74   : > { %1193 = vst.msk [vmem:[%s1620_s26 + $0x1b0] sm:$0xf] %vm1084_vm0, %v1518_v17  ;;  %1194 = vst.msk [vmem:[%s1620_s26 + $0x1b4] sm:$0xf] %vm1084_vm0, %v1519_v18  ;;  %v425_v28 = vmul.f32 %v2129_v51, %v290_v14  ;;  %v426_v29 = vmul.f32 %v2129_v51, %v291_v15  ;;  %v556_v30 = vadd.f32 %v2112_v42, %v421_v22 }
  0x75   : > { %1195 = vst.msk [vmem:[%s1620_s26 + $0x1b8] sm:$0xf] %vm1084_vm0, %v1520_v21  ;;  %v557_v31 = vadd.f32 %v2112_v42, %v422_v23  ;;  %v558_v32 = vadd.f32 %v2112_v42, %v423_v24  ;;  %v427_v33 = vmul.f32 %v2129_v51, %v292_v20  ;;  %1196 = vst.msk [vmem:[%s1620_s26 + $0x1bc] sm:$0xf] %vm1084_vm0, %v1521_v26 }
  0x76   : > { %v559_v34 = vadd.f32 %v2112_v42, %v424_v27  ;;  %v560_v35 = vadd.f32 %v2112_v42, %v425_v28  ;;  %v561_v36 = vadd.f32 %v2112_v42, %v426_v29  ;;  %v428_v37 = vmul.f32 %v2129_v51, %v293_v25 }
  0x77   : > { %v1522_v41 = vpack.c.bf16 %v556_v30, %v556_v30  ;;  %v1523_v43 = vpack.c.bf16 %v557_v31, %v557_v31  ;;  %v1524_v1 = vpack.c.bf16 %v558_v32, %v558_v32  ;;  %v562_v0 = vadd.f32 %v2112_v42, %v427_v33 }
  0x78   : > { %v1525_v47 = vpack.c.bf16 %v559_v34, %v559_v34  ;;  %v1526_v48 = vpack.c.bf16 %v560_v35, %v560_v35  ;;  %v1527_v49 = vpack.c.bf16 %v561_v36, %v561_v36  ;;  %v563_v50 = vadd.f32 %v2112_v42, %v428_v37 }
  0x79   : > { %1197 = vst.msk [vmem:[%s1620_s26 + $0x1c0] sm:$0xf] %vm1084_vm0, %v1522_v41  ;;  %1198 = vst.msk [vmem:[%s1620_s26 + $0x1c4] sm:$0xf] %vm1084_vm0, %v1523_v43  ;;  %v1528_v53 = vpack.c.bf16 %v562_v0, %v562_v0  ;;  %v429_v54 = vmul.f32 %v2129_v51, %v294_v38  ;;  %v430_v55 = vmul.f32 %v2129_v51, %v295_v39 }
  0x7a   : > { %1199 = vst.msk [vmem:[%s1620_s26 + $0x1c8] sm:$0xf] %vm1084_vm0, %v1524_v1  ;;  %v431_v56 = vmul.f32 %v2129_v51, %v296_v40  ;;  %1200 = vst.msk [vmem:[%s1620_s26 + $0x1cc] sm:$0xf] %vm1084_vm0, %v1525_v47  ;;  %v1529_v58 = vpack.c.bf16 %v563_v50, %v563_v50  ;;  %v432_v59 = vmul.f32 %v2129_v51, %v297_v44 }
  0x7b   : > { %1201 = vst.msk [vmem:[%s1620_s26 + $0x1d0] sm:$0xf] %vm1084_vm0, %v1526_v48  ;;  %1202 = vst.msk [vmem:[%s1620_s26 + $0x1d4] sm:$0xf] %vm1084_vm0, %v1527_v49  ;;  %v433_v60 = vmul.f32 %v2129_v51, %v298_v45  ;;  %v434_v61 = vmul.f32 %v2129_v51, %v299_v46  ;;  %v564_v62 = vadd.f32 %v2112_v42, %v429_v54 }
  0x7c   : > { %1203 = vst.msk [vmem:[%s1620_s26 + $0x1d8] sm:$0xf] %vm1084_vm0, %v1528_v53  ;;  %v565_v63 = vadd.f32 %v2112_v42, %v430_v55  ;;  %v566_v2 = vadd.f32 %v2112_v42, %v431_v56  ;;  %v435_v3 = vmul.f32 %v2129_v51, %v300_v52  ;;  %1204 = vst.msk [vmem:[%s1620_s26 + $0x1dc] sm:$0xf] %vm1084_vm0, %v1529_v58 }
  0x7d   : > { %v567_v4 = vadd.f32 %v2112_v42, %v432_v59  ;;  %v568_v5 = vadd.f32 %v2112_v42, %v433_v60  ;;  %v569_v6 = vadd.f32 %v2112_v42, %v434_v61  ;;  %v436_v7 = vmul.f32 %v2129_v51, %v301_v57 }
  0x7e   : > { %v1530_v8 = vpack.c.bf16 %v564_v62, %v564_v62  ;;  %v1531_v9 = vpack.c.bf16 %v565_v63, %v565_v63  ;;  %v1532_v10 = vpack.c.bf16 %v566_v2, %v566_v2  ;;  %v570_v11 = vadd.f32 %v2112_v42, %v435_v3 }
  0x7f   : > { %v1533_v12 = vpack.c.bf16 %v567_v4, %v567_v4  ;;  %v1534_v13 = vpack.c.bf16 %v568_v5, %v568_v5  ;;  %v1535_v14 = vpack.c.bf16 %v569_v6, %v569_v6  ;;  %v571_v15 = vadd.f32 %v2112_v42, %v436_v7 }
  0x80   : > { %1205 = vst.msk [vmem:[%s1620_s26 + $0x1e0] sm:$0xf] %vm1084_vm0, %v1530_v8  ;;  %1206 = vst.msk [vmem:[%s1620_s26 + $0x1e4] sm:$0xf] %vm1084_vm0, %v1531_v9  ;;  %v1536_v16 = vpack.c.bf16 %v570_v11, %v570_v11 }
  0x81   : > { %1207 = vst.msk [vmem:[%s1620_s26 + $0x1e8] sm:$0xf] %vm1084_vm0, %v1532_v10  ;;  %1208 = vst.msk [vmem:[%s1620_s26 + $0x1ec] sm:$0xf] %vm1084_vm0, %v1533_v12  ;;  %v1537_v51 = vpack.c.bf16 %v571_v15, %v571_v15 }
  0x82   : > { %1209 = vst.msk [vmem:[%s1620_s26 + $0x1f0] sm:$0xf] %vm1084_vm0, %v1534_v13  ;;  %1210 = vst.msk [vmem:[%s1620_s26 + $0x1f4] sm:$0xf] %vm1084_vm0, %v1535_v14 }
  0x83   : > { %1211 = vst.msk [vmem:[%s1620_s26 + $0x1f8] sm:$0xf] %vm1084_vm0, %v1536_v16  ;;  %1212 = vst.msk [vmem:[%s1620_s26 + $0x1fc] sm:$0xf] %vm1084_vm0, %v1537_v51 }
  0x84 PF: > { %s13_s12 = sadd.s32 1, %s1554_s12  }
  0x85   : > { %p10_p4 = scmp.ge.s32.totalorder %s13_s12, 10  }
  0x87   :  { %12 = sbr.rel (!%p10_p4) target bundleno = 1 (0x1), region = 62 }

</bundles_post_ra>
